<compile_context>
chip_gen: v6e
topology: v6e:2x2x1
jax: 0.10.0
libtpu: 0.0.40
codegen_flags: <defaults>
</compile_context>

<pallas_src>
import functools
import numpy as np
import jax
import jax.numpy as jnp
from jax import lax
from jax.experimental import pallas as pl
from jax.experimental.pallas import tpu as pltpu


# --------------------------------------------------------------------------
# Helpers (pure jnp; used both inside the kernel trace and by host references)
# --------------------------------------------------------------------------
def _round_up(n, m):
    return ((n + m - 1) // m) * m


def _pad_to(a, shape):
    return jnp.pad(a, [(0, s - d) for d, s in zip(a.shape, shape)])


def _leaky(v, slope):
    return jnp.where(v >= 0, v, slope * v)


def _layernorm(v, g, b, n_valid, eps=1e-5):
    # One-pass variance (the two cross-lane reductions are independent and can
    # overlap on the XLUs).  Sums run over the (zero-)padded lane axis but are
    # divided by the number of VALID lanes, so lane padding is transparent.
    # Pad lanes of v are exactly 0 and g/b are 0 there, so outputs stay 0.
    inv_n = jnp.float32(1.0 / n_valid)
    mu = jnp.sum(v, axis=-1, keepdims=True) * inv_n
    ms = jnp.sum(v * v, axis=-1, keepdims=True) * inv_n
    var = ms - mu * mu
    return (v - mu) * lax.rsqrt(var + eps) * g + b


def _dot(a, w):
    # weights are stored bf16; cast the activation to bf16 right before the
    # dot (MXU-native bf16 rate), accumulate in f32, keep elementwise math f32.
    return jnp.dot(a.astype(jnp.bfloat16), w, preferred_element_type=jnp.float32)


# --------------------------------------------------------------------------
# Pallas kernel: entire Generator.forward hot path (one batch tile per step)
# --------------------------------------------------------------------------
def generator_kernel(x_ref, w1_ref, b1_ref, g0_ref, be0_ref,
                     wf_ref, bf_ref, wl_ref, bl_ref, g1_ref, be1_ref,
                     w2_ref, b2_ref, o_ref, *, h_valid, num_blocks):
    x = x_ref[...]
    # out = layernorm0(LeakyReLU(0.2)(fc1(x)))      (lane-padded to Hp)
    out = _leaky(_dot(x, w1_ref[...]) + b1_ref[...], 0.2)
    out = _layernorm(out, g0_ref[...], be0_ref[...], h_valid)

    def block(i, out):
        res = out
        # fused [gaussian-conv -> Linear(h_dim, 64)] x3 as a single (Hp, 256)
        # matmul; Toeplitz matrices folded into wf on the host, inner dim
        # zero-padded 192 -> 256 (full-width MXU pass, numerically identical).
        cat = _leaky(_dot(out, wf_ref[i]) + bf_ref[i], 0.1)       # (TB, 256)
        out = _dot(cat, wl_ref[i]) + bl_ref[i] + res
        return _layernorm(out, g1_ref[i], be1_ref[i], h_valid)

    if num_blocks <= 4:
        for i in range(num_blocks):          # tiny depth: static unroll is fine
            out = block(i, out)
    else:
        # deeper stacks: bound vreg live ranges (avoid spills at large tile_b)
        out = lax.fori_loop(0, num_blocks, block, out, unroll=True)

    # Dp is a multiple of 128 -> unmasked full-lane store.
    o_ref[...] = jnp.tanh(_dot(out, w2_ref[...]) + b2_ref[...])


def generator_forward(x, kernel_params, *, h_dim, data_dim, tile_b=None):
    (w1, b1, g0, be0, wf, bf, wl, bl, g1, be1, w2, b2) = kernel_params
    B, Z = x.shape
    Hp = w1.shape[1]          # padded hidden width (multiple of 128)
    Cp = wf.shape[2]          # padded fused width (192 -> 256)
    Dp = w2.shape[1]          # padded output width (multiple of 128)
    num_blocks = wf.shape[0]

    # ---- batch-tile heuristic ------------------------------------------------
    # Per-step MXU work is tiny at these feature dims; the kernel is grid-step-
    # overhead bound, so take the biggest tile the VMEM budget allows (cap 2048),
    # 16-aligned (bf16 sublane packing), and keep >= 2 grid steps when the batch
    # is big enough so both v7x TensorCores get work (dimension "parallel").
    per_row_bytes = 4 * (2 * Z + 2 * Dp + 4 * Hp + 2 * Cp)   # io tiles + out/res/cat/LN temps
    act_budget = 24 << 20                                    # conservative for v7x (64 MiB VMEM)
    vmem_cap = max(16, (act_budget // per_row_bytes) // 16 * 16)
    if tile_b is None:
        tile_b = min(2048, vmem_cap, _round_up(B, 16))
        if B >= 64 and tile_b >= B:
            tile_b = _round_up(pl.cdiv(B, 2), 16)            # >= 2 parallel steps
    else:
        tile_b = max(16, min(_round_up(tile_b, 16), vmem_cap))  # force alignment
    n_steps = pl.cdiv(B, tile_b)
    tile_b = _round_up(pl.cdiv(B, n_steps), 16)              # rebalance -> minimal padding
    Bp = n_steps * tile_b
    xp = x if Bp == B else jnp.pad(x, ((0, Bp - B), (0, 0)))  # exact grid division

    # Grid-invariant weights: whole-array VMEM residents, copied in ONCE
    # (single-buffered; no per-step DMA, half the VMEM of double-buffering).
    weight_spec = pl.BlockSpec(memory_space=pltpu.MemorySpace.VMEM)
    in_specs = [pl.BlockSpec((tile_b, Z), lambda i: (i, 0))]
    in_specs += [weight_spec] * len(kernel_params)
    out_specs = pl.BlockSpec((tile_b, Dp), lambda i: (i, 0))

    # VMEM budget: weights once + double-buffered act tiles + in-kernel
    # intermediates (out, res, cat, layernorm temps) + slack.
    param_bytes = sum(int(np.prod(p.shape)) * p.dtype.itemsize for p in kernel_params)
    vmem_limit = int(param_bytes
                     + 2 * tile_b * (Z + Dp) * 4
                     + tile_b * (4 * Hp + 2 * Cp) * 4
                     + (8 << 20))
    vmem_limit = min(vmem_limit, 128 << 20)

    kernel = functools.partial(generator_kernel, h_valid=h_dim, num_blocks=num_blocks)
    out_p = pl.pallas_call(
        kernel,
        out_shape=jax.ShapeDtypeStruct((Bp, Dp), jnp.float32),
        grid=(n_steps,),
        in_specs=in_specs,
        out_specs=out_specs,
        compiler_params=pltpu.CompilerParams(
            dimension_semantics=("parallel",),
            vmem_limit_bytes=vmem_limit),
    )(xp, *kernel_params)
    return out_p[:B, :data_dim]


# --------------------------------------------------------------------------
# Glue: gaussian windows, Toeplitz conv matrices, host-side fusion, params
# --------------------------------------------------------------------------
def gaussian_window(M, std):
    # scipy.signal.windows.gaussian(M, std)
    n = np.arange(M, dtype=np.float64) - (M - 1) / 2.0
    return np.exp(-0.5 * (n / std) ** 2).astype(np.float32)


def toeplitz_same_corr(filt, length):
    # y[t] = sum_j x[t + j - left] * w[j]   (PyTorch conv1d padding='same')
    G = filt.shape[0]
    left = (G - 1) // 2
    s = np.arange(length)[:, None]
    t = np.arange(length)[None, :]
    j = s - t + left
    valid = (j >= 0) & (j < G)
    M = np.where(valid, filt[np.clip(j, 0, G - 1)], 0.0).astype(np.float32)
    return jnp.asarray(M)                # (length, length), y = x @ M


def init_params(key, z_dim, data_dim, h_dim, num_blocks, gauss_filter_dim):
    C = 64  # 2 ** 6
    C3 = 3 * C
    Hp = _round_up(h_dim, 128)          # lane-dense hidden width
    Dp = _round_up(data_dim, 128)       # lane-dense output width
    Cp = _round_up(C3, 128)             # 192 -> 256 (full MXU pass on v6e/v7x)

    def lin(k, fan_in, fan_out):
        bound = 1.0 / np.sqrt(fan_in)
        kw, kb = jax.random.split(k)
        w = jax.random.uniform(kw, (fan_in, fan_out), jnp.float32, -bound, bound)
        b = jax.random.uniform(kb, (1, fan_out), jnp.float32, -bound, bound)
        return w, b

    keys = jax.random.split(key, 2 + 4 * num_blocks)
    w1, b1 = lin(keys[0], z_dim, h_dim)
    w2, b2 = lin(keys[1], h_dim, data_dim)
    g0 = jnp.ones((1, h_dim), jnp.float32)
    be0 = jnp.zeros((1, h_dim), jnp.float32)

    wc1, bc1, wc2, bc2, wc3, bc3, wl, bl = ([] for _ in range(8))
    for i in range(num_blocks):
        k1, k2, k3, k4 = keys[2 + 4 * i: 6 + 4 * i]
        w, b = lin(k1, h_dim, C); wc1.append(w); bc1.append(b)
        w, b = lin(k2, h_dim, C); wc2.append(w); bc2.append(b)
        w, b = lin(k3, h_dim, C); wc3.append(w); bc3.append(b)
        w, b = lin(k4, C3, h_dim); wl.append(w); bl.append(b)

    stack = lambda lst: jnp.stack(lst, axis=0)
    wc1, wc2, wc3, wl_s = stack(wc1), stack(wc2), stack(wc3), stack(wl)
    bc1, bc2, bc3, bl_s = stack(bc1), stack(bc2), stack(bc3), stack(bl)
    g1 = jnp.ones((num_blocks, 1, h_dim), jnp.float32)
    be1 = jnp.zeros((num_blocks, 1, h_dim), jnp.float32)

    m1 = toeplitz_same_corr(gaussian_window(gauss_filter_dim, 0.5), h_dim)
    m2 = toeplitz_same_corr(gaussian_window(gauss_filter_dim, 1.0), h_dim)
    m3 = toeplitz_same_corr(gaussian_window(gauss_filter_dim, 3.0), h_dim)

    # unfused f32 params: reference that mirrors the PyTorch forward exactly
    ref_params = (w1, b1, g0, be0, m1, m2, m3,
                  wc1, bc1, wc2, bc2, wc3, bc3, wl_s, bl_s, g1, be1, w2, b2)

    # host-side fusion: (out @ m_k) @ Wc_k == out @ (m_k @ Wc_k); concatenate
    # the three fused weights per block (leaky commutes with the lane concat),
    # then zero-pad everything to lane-dense (Hp, Cp, Dp) shapes.  Zero pads
    # contribute exactly zero everywhere (leaky(0)=0, zero rows/cols of the
    # matmuls, gamma/beta zero on pad lanes), so the math is unchanged.
    wf = jnp.stack(
        [jnp.concatenate([m1 @ wc1[i], m2 @ wc2[i], m3 @ wc3[i]], axis=1)
         for i in range(num_blocks)], axis=0)                        # (NB, H, 3C)
    bf = jnp.concatenate([bc1, bc2, bc3], axis=-1)                   # (NB, 1, 3C)

    w1_p = _pad_to(w1, (z_dim, Hp))
    b1_p = _pad_to(b1, (1, Hp))
    g0_p = _pad_to(g0, (1, Hp))
    be0_p = _pad_to(be0, (1, Hp))
    wf_p = _pad_to(wf, (num_blocks, Hp, Cp))
    bf_p = _pad_to(bf, (num_blocks, 1, Cp))
    wl_p = _pad_to(wl_s, (num_blocks, Cp, Hp))
    bl_p = _pad_to(bl_s, (num_blocks, 1, Hp))
    g1_p = _pad_to(g1, (num_blocks, 1, Hp))
    be1_p = _pad_to(be1, (num_blocks, 1, Hp))
    w2_p = _pad_to(w2, (Hp, Dp))
    b2_p = _pad_to(b2, (1, Dp))

    bf16 = jnp.bfloat16
    kernel_params = (w1_p.astype(bf16), b1_p, g0_p, be0_p,
                     wf_p.astype(bf16), bf_p,
                     wl_p.astype(bf16), bl_p, g1_p, be1_p,
                     w2_p.astype(bf16), b2_p)
    return kernel_params, ref_params


# --------------------------------------------------------------------------
# Pure-JAX references for correctness checks
# --------------------------------------------------------------------------
def reference_forward_f32(x, ref_params):
    # mirrors the PyTorch forward (unfused, unpadded, full f32)
    (w1, b1, g0, be0, m1, m2, m3,
     wc1, bc1, wc2, bc2, wc3, bc3, wl, bl, g1, be1, w2, b2) = ref_params
    H = w1.shape[1]
    out = _layernorm(_leaky(x @ w1 + b1, 0.2), g0, be0, H)
    for i in range(wc1.shape[0]):
        res = out
        x1 = _leaky((out @ m1) @ wc1[i] + bc1[i], 0.1)
        x2 = _leaky((out @ m2) @ wc2[i] + bc2[i], 0.1)
        x3 = _leaky((out @ m3) @ wc3[i] + bc3[i], 0.1)
        out = jnp.concatenate([x1, x2, x3], axis=1) @ wl[i] + bl[i]
        out = _layernorm(out + res, g1[i], be1[i], H)
    return jnp.tanh(out @ w2 + b2)


def reference_forward_matched(x, kernel_params, h_dim, data_dim):
    # same fused / padded / mixed-precision math as the Pallas kernel, plain JAX
    (w1, b1, g0, be0, wf, bf, wl, bl, g1, be1, w2, b2) = kernel_params
    out = _layernorm(_leaky(_dot(x, w1) + b1, 0.2), g0, be0, h_dim)
    for i in range(wf.shape[0]):
        res = out
        cat = _leaky(_dot(out, wf[i]) + bf[i], 0.1)
        out = _layernorm(_dot(cat, wl[i]) + bl[i] + res, g1[i], be1[i], h_dim)
    return jnp.tanh(_dot(out, w2) + b2)[:, :data_dim]


# TODO(synk): feed_forward_generator_layers{,2} and layernorm_layers_2 in
# __init__ are never used in Generator.forward, so they are intentionally
# omitted (as is the Dropout inside them).

if __name__ == "__main__":
    B, Z, H, D, NB, G = 8, 16, 64, 32, 2, 5
    key = jax.random.PRNGKey(0)
    kx, kp = jax.random.split(key)
    x = jax.random.normal(kx, (B, Z), jnp.float32)
    kernel_params, ref_params = init_params(kp, Z, D, H, NB, G)

    out = jax.block_until_ready(
        generator_forward(x, kernel_params, h_dim=H, data_dim=D))
    assert out.shape == (B, D) and out.dtype == jnp.float32

    # tight check vs. a reference doing the exact same fused/padded bf16 math
    ref_m = reference_forward_matched(x, kernel_params, H, D)
    np.testing.assert_allclose(np.asarray(out), np.asarray(ref_m),
                               atol=2e-3, rtol=2e-3)
    # loose check vs. the pure-f32 unfused (PyTorch-equivalent) forward;
    # slack only covers bf16 weight quantization, catches any fusion/pad bug.
    ref_f = reference_forward_f32(x, ref_params)
    np.testing.assert_allclose(np.asarray(out), np.asarray(ref_f),
                               atol=1e-1, rtol=1e-1)
    print("KERNEL_OK")
</pallas_src>

<mosaic_0001>
module attributes {stable_mosaic.version = 11 : i64} {
  func.func @generator_kernel(%arg0: i32, %arg1: memref<16x16xf32, #tpu.memory_space<vmem>>, %arg2: memref<16x128xbf16, #tpu.memory_space<vmem>>, %arg3: memref<1x128xf32, #tpu.memory_space<vmem>>, %arg4: memref<1x128xf32, #tpu.memory_space<vmem>>, %arg5: memref<1x128xf32, #tpu.memory_space<vmem>>, %arg6: memref<2x128x256xbf16, #tpu.memory_space<vmem>>, %arg7: memref<2x1x256xf32, #tpu.memory_space<vmem>>, %arg8: memref<2x256x128xbf16, #tpu.memory_space<vmem>>, %arg9: memref<2x1x128xf32, #tpu.memory_space<vmem>>, %arg10: memref<2x1x128xf32, #tpu.memory_space<vmem>>, %arg11: memref<2x1x128xf32, #tpu.memory_space<vmem>>, %arg12: memref<128x128xbf16, #tpu.memory_space<vmem>>, %arg13: memref<1x128xf32, #tpu.memory_space<vmem>>, %arg14: memref<16x128xf32, #tpu.memory_space<vmem>>) attributes {dimension_semantics = [#tpu.dimension_semantics<parallel>], iteration_bounds = array<i64: 1>, scalar_prefetch = 0 : i64, scratch_operands = 0 : i64, tpu.core_type = #tpu.core_type<tc>, window_params = [{transform_indices = @transform_0, window_bounds = array<i64: 16, 16>}, {pipeline_mode = #tpu.pipeline_mode<synchronous>, transform_indices = @transform_1, window_bounds = array<i64: 16, 128>}, {pipeline_mode = #tpu.pipeline_mode<synchronous>, transform_indices = @transform_2, window_bounds = array<i64: 1, 128>}, {pipeline_mode = #tpu.pipeline_mode<synchronous>, transform_indices = @transform_3, window_bounds = array<i64: 1, 128>}, {pipeline_mode = #tpu.pipeline_mode<synchronous>, transform_indices = @transform_4, window_bounds = array<i64: 1, 128>}, {pipeline_mode = #tpu.pipeline_mode<synchronous>, transform_indices = @transform_5, window_bounds = array<i64: 2, 128, 256>}, {pipeline_mode = #tpu.pipeline_mode<synchronous>, transform_indices = @transform_6, window_bounds = array<i64: 2, 1, 256>}, {pipeline_mode = #tpu.pipeline_mode<synchronous>, transform_indices = @transform_7, window_bounds = array<i64: 2, 256, 128>}, {pipeline_mode = #tpu.pipeline_mode<synchronous>, transform_indices = @transform_8, window_bounds = array<i64: 2, 1, 128>}, {pipeline_mode = #tpu.pipeline_mode<synchronous>, transform_indices = @transform_9, window_bounds = array<i64: 2, 1, 128>}, {pipeline_mode = #tpu.pipeline_mode<synchronous>, transform_indices = @transform_10, window_bounds = array<i64: 2, 1, 128>}, {pipeline_mode = #tpu.pipeline_mode<synchronous>, transform_indices = @transform_11, window_bounds = array<i64: 128, 128>}, {pipeline_mode = #tpu.pipeline_mode<synchronous>, transform_indices = @transform_12, window_bounds = array<i64: 1, 128>}, {transform_indices = @transform_13, window_bounds = array<i64: 16, 128>}]} {
    %c0 = arith.constant 0 : index
    %c0_0 = arith.constant 0 : index
    %0 = vector.load %arg1[%c0, %c0_0] : memref<16x16xf32, #tpu.memory_space<vmem>>, vector<16x16xf32>
    %c0_1 = arith.constant 0 : index
    %c0_2 = arith.constant 0 : index
    %1 = vector.load %arg2[%c0_1, %c0_2] : memref<16x128xbf16, #tpu.memory_space<vmem>>, vector<16x128xbf16>
    %2 = arith.truncf %0 : vector<16x16xf32> to vector<16x16xbf16>
    %cst = arith.constant dense<0.000000e+00> : vector<16x128xf32>
    %3 = tpu.matmul %2, %1, %cst {dimension_numbers = #tpu.dot_dimension_numbers<[1], [0], [0], [1], [0, 0, 1, 1], [], []>} : vector<16x16xbf16>, vector<16x128xbf16>, vector<16x128xf32> -> vector<16x128xf32>
    %c0_3 = arith.constant 0 : index
    %c0_4 = arith.constant 0 : index
    %4 = vector.load %arg3[%c0_3, %c0_4] : memref<1x128xf32, #tpu.memory_space<vmem>>, vector<1x128xf32>
    %5 = vector.broadcast %4 : vector<1x128xf32> to vector<16x128xf32>
    %6 = arith.addf %3, %5 : vector<16x128xf32>
    %cst_5 = arith.constant 0.000000e+00 : f32
    %7 = vector.broadcast %cst_5 : f32 to vector<16x128xf32>
    %8 = arith.cmpf oge, %6, %7 : vector<16x128xf32>
    %cst_6 = arith.constant 2.000000e-01 : f32
    %9 = vector.broadcast %cst_6 : f32 to vector<16x128xf32>
    %10 = arith.mulf %9, %6 : vector<16x128xf32>
    %11 = arith.select %8, %6, %10 : vector<16x128xi1>, vector<16x128xf32>
    %c0_7 = arith.constant 0 : index
    %c0_8 = arith.constant 0 : index
    %12 = vector.load %arg4[%c0_7, %c0_8] : memref<1x128xf32, #tpu.memory_space<vmem>>, vector<1x128xf32>
    %c0_9 = arith.constant 0 : index
    %c0_10 = arith.constant 0 : index
    %13 = vector.load %arg5[%c0_9, %c0_10] : memref<1x128xf32, #tpu.memory_space<vmem>>, vector<1x128xf32>
    %cst_11 = arith.constant dense<0.000000e+00> : vector<16xf32>
    %14 = vector.multi_reduction <add>, %11, %cst_11 [1] : vector<16x128xf32> to vector<16xf32>
    %15 = vector.shape_cast %14 : vector<16xf32> to vector<16x1xf32>
    %cst_12 = arith.constant 1.562500e-02 : f32
    %16 = vector.broadcast %cst_12 : f32 to vector<16x1xf32>
    %17 = arith.mulf %15, %16 : vector<16x1xf32>
    %18 = arith.mulf %11, %11 : vector<16x128xf32>
    %cst_13 = arith.constant dense<0.000000e+00> : vector<16xf32>
    %19 = vector.multi_reduction <add>, %18, %cst_13 [1] : vector<16x128xf32> to vector<16xf32>
    %20 = vector.shape_cast %19 : vector<16xf32> to vector<16x1xf32>
    %cst_14 = arith.constant 1.562500e-02 : f32
    %21 = vector.broadcast %cst_14 : f32 to vector<16x1xf32>
    %22 = arith.mulf %20, %21 : vector<16x1xf32>
    %23 = arith.mulf %17, %17 : vector<16x1xf32>
    %24 = arith.subf %22, %23 : vector<16x1xf32>
    %25 = vector.broadcast %17 : vector<16x1xf32> to vector<16x128xf32>
    %26 = arith.subf %11, %25 : vector<16x128xf32>
    %cst_15 = arith.constant 9.99999974E-6 : f32
    %27 = vector.broadcast %cst_15 : f32 to vector<16x1xf32>
    %28 = arith.addf %24, %27 : vector<16x1xf32>
    %29 = math.rsqrt %28 : vector<16x1xf32>
    %30 = vector.broadcast %29 : vector<16x1xf32> to vector<16x128xf32>
    %31 = arith.mulf %26, %30 : vector<16x128xf32>
    %32 = vector.broadcast %12 : vector<1x128xf32> to vector<16x128xf32>
    %33 = arith.mulf %31, %32 : vector<16x128xf32>
    %34 = vector.broadcast %13 : vector<1x128xf32> to vector<16x128xf32>
    %35 = arith.addf %33, %34 : vector<16x128xf32>
    %c0_16 = arith.constant 0 : index
    %c0_17 = arith.constant 0 : index
    %c0_18 = arith.constant 0 : index
    %36 = vector.load %arg6[%c0_16, %c0_17, %c0_18] : memref<2x128x256xbf16, #tpu.memory_space<vmem>>, vector<1x128x256xbf16>
    %37 = vector.shape_cast %36 : vector<1x128x256xbf16> to vector<128x256xbf16>
    %38 = arith.truncf %35 : vector<16x128xf32> to vector<16x128xbf16>
    %cst_19 = arith.constant dense<0.000000e+00> : vector<16x256xf32>
    %39 = tpu.matmul %38, %37, %cst_19 {dimension_numbers = #tpu.dot_dimension_numbers<[1], [0], [0], [1], [0, 0, 1, 1], [], []>} : vector<16x128xbf16>, vector<128x256xbf16>, vector<16x256xf32> -> vector<16x256xf32>
    %c0_20 = arith.constant 0 : index
    %c0_21 = arith.constant 0 : index
    %c0_22 = arith.constant 0 : index
    %40 = vector.load %arg7[%c0_20, %c0_21, %c0_22] : memref<2x1x256xf32, #tpu.memory_space<vmem>>, vector<1x1x256xf32>
    %41 = vector.shape_cast %40 : vector<1x1x256xf32> to vector<1x256xf32>
    %42 = vector.broadcast %41 : vector<1x256xf32> to vector<16x256xf32>
    %43 = arith.addf %39, %42 : vector<16x256xf32>
    %cst_23 = arith.constant 0.000000e+00 : f32
    %44 = vector.broadcast %cst_23 : f32 to vector<16x256xf32>
    %45 = arith.cmpf oge, %43, %44 : vector<16x256xf32>
    %cst_24 = arith.constant 1.000000e-01 : f32
    %46 = vector.broadcast %cst_24 : f32 to vector<16x256xf32>
    %47 = arith.mulf %46, %43 : vector<16x256xf32>
    %48 = arith.select %45, %43, %47 : vector<16x256xi1>, vector<16x256xf32>
    %c0_25 = arith.constant 0 : index
    %c0_26 = arith.constant 0 : index
    %c0_27 = arith.constant 0 : index
    %49 = vector.load %arg8[%c0_25, %c0_26, %c0_27] : memref<2x256x128xbf16, #tpu.memory_space<vmem>>, vector<1x256x128xbf16>
    %50 = vector.shape_cast %49 : vector<1x256x128xbf16> to vector<256x128xbf16>
    %51 = arith.truncf %48 : vector<16x256xf32> to vector<16x256xbf16>
    %cst_28 = arith.constant dense<0.000000e+00> : vector<16x128xf32>
    %52 = tpu.matmul %51, %50, %cst_28 {dimension_numbers = #tpu.dot_dimension_numbers<[1], [0], [0], [1], [0, 0, 1, 1], [], []>} : vector<16x256xbf16>, vector<256x128xbf16>, vector<16x128xf32> -> vector<16x128xf32>
    %c0_29 = arith.constant 0 : index
    %c0_30 = arith.constant 0 : index
    %c0_31 = arith.constant 0 : index
    %53 = vector.load %arg9[%c0_29, %c0_30, %c0_31] : memref<2x1x128xf32, #tpu.memory_space<vmem>>, vector<1x1x128xf32>
    %54 = vector.shape_cast %53 : vector<1x1x128xf32> to vector<1x128xf32>
    %55 = vector.broadcast %54 : vector<1x128xf32> to vector<16x128xf32>
    %56 = arith.addf %52, %55 : vector<16x128xf32>
    %57 = arith.addf %56, %35 : vector<16x128xf32>
    %c0_32 = arith.constant 0 : index
    %c0_33 = arith.constant 0 : index
    %c0_34 = arith.constant 0 : index
    %58 = vector.load %arg10[%c0_32, %c0_33, %c0_34] : memref<2x1x128xf32, #tpu.memory_space<vmem>>, vector<1x1x128xf32>
    %59 = vector.shape_cast %58 : vector<1x1x128xf32> to vector<1x128xf32>
    %c0_35 = arith.constant 0 : index
    %c0_36 = arith.constant 0 : index
    %c0_37 = arith.constant 0 : index
    %60 = vector.load %arg11[%c0_35, %c0_36, %c0_37] : memref<2x1x128xf32, #tpu.memory_space<vmem>>, vector<1x1x128xf32>
    %61 = vector.shape_cast %60 : vector<1x1x128xf32> to vector<1x128xf32>
    %cst_38 = arith.constant dense<0.000000e+00> : vector<16xf32>
    %62 = vector.multi_reduction <add>, %57, %cst_38 [1] : vector<16x128xf32> to vector<16xf32>
    %63 = vector.shape_cast %62 : vector<16xf32> to vector<16x1xf32>
    %cst_39 = arith.constant 1.562500e-02 : f32
    %64 = vector.broadcast %cst_39 : f32 to vector<16x1xf32>
    %65 = arith.mulf %63, %64 : vector<16x1xf32>
    %66 = arith.mulf %57, %57 : vector<16x128xf32>
    %cst_40 = arith.constant dense<0.000000e+00> : vector<16xf32>
    %67 = vector.multi_reduction <add>, %66, %cst_40 [1] : vector<16x128xf32> to vector<16xf32>
    %68 = vector.shape_cast %67 : vector<16xf32> to vector<16x1xf32>
    %cst_41 = arith.constant 1.562500e-02 : f32
    %69 = vector.broadcast %cst_41 : f32 to vector<16x1xf32>
    %70 = arith.mulf %68, %69 : vector<16x1xf32>
    %71 = arith.mulf %65, %65 : vector<16x1xf32>
    %72 = arith.subf %70, %71 : vector<16x1xf32>
    %73 = vector.broadcast %65 : vector<16x1xf32> to vector<16x128xf32>
    %74 = arith.subf %57, %73 : vector<16x128xf32>
    %cst_42 = arith.constant 9.99999974E-6 : f32
    %75 = vector.broadcast %cst_42 : f32 to vector<16x1xf32>
    %76 = arith.addf %72, %75 : vector<16x1xf32>
    %77 = math.rsqrt %76 : vector<16x1xf32>
    %78 = vector.broadcast %77 : vector<16x1xf32> to vector<16x128xf32>
    %79 = arith.mulf %74, %78 : vector<16x128xf32>
    %80 = vector.broadcast %59 : vector<1x128xf32> to vector<16x128xf32>
    %81 = arith.mulf %79, %80 : vector<16x128xf32>
    %82 = vector.broadcast %61 : vector<1x128xf32> to vector<16x128xf32>
    %83 = arith.addf %81, %82 : vector<16x128xf32>
    %c1 = arith.constant 1 : index
    %c0_43 = arith.constant 0 : index
    %c0_44 = arith.constant 0 : index
    %84 = vector.load %arg6[%c1, %c0_43, %c0_44] : memref<2x128x256xbf16, #tpu.memory_space<vmem>>, vector<1x128x256xbf16>
    %85 = vector.shape_cast %84 : vector<1x128x256xbf16> to vector<128x256xbf16>
    %86 = arith.truncf %83 : vector<16x128xf32> to vector<16x128xbf16>
    %cst_45 = arith.constant dense<0.000000e+00> : vector<16x256xf32>
    %87 = tpu.matmul %86, %85, %cst_45 {dimension_numbers = #tpu.dot_dimension_numbers<[1], [0], [0], [1], [0, 0, 1, 1], [], []>} : vector<16x128xbf16>, vector<128x256xbf16>, vector<16x256xf32> -> vector<16x256xf32>
    %c1_46 = arith.constant 1 : index
    %c0_47 = arith.constant 0 : index
    %c0_48 = arith.constant 0 : index
    %88 = vector.load %arg7[%c1_46, %c0_47, %c0_48] : memref<2x1x256xf32, #tpu.memory_space<vmem>>, vector<1x1x256xf32>
    %89 = vector.shape_cast %88 : vector<1x1x256xf32> to vector<1x256xf32>
    %90 = vector.broadcast %89 : vector<1x256xf32> to vector<16x256xf32>
    %91 = arith.addf %87, %90 : vector<16x256xf32>
    %cst_49 = arith.constant 0.000000e+00 : f32
    %92 = vector.broadcast %cst_49 : f32 to vector<16x256xf32>
    %93 = arith.cmpf oge, %91, %92 : vector<16x256xf32>
    %cst_50 = arith.constant 1.000000e-01 : f32
    %94 = vector.broadcast %cst_50 : f32 to vector<16x256xf32>
    %95 = arith.mulf %94, %91 : vector<16x256xf32>
    %96 = arith.select %93, %91, %95 : vector<16x256xi1>, vector<16x256xf32>
    %c1_51 = arith.constant 1 : index
    %c0_52 = arith.constant 0 : index
    %c0_53 = arith.constant 0 : index
    %97 = vector.load %arg8[%c1_51, %c0_52, %c0_53] : memref<2x256x128xbf16, #tpu.memory_space<vmem>>, vector<1x256x128xbf16>
    %98 = vector.shape_cast %97 : vector<1x256x128xbf16> to vector<256x128xbf16>
    %99 = arith.truncf %96 : vector<16x256xf32> to vector<16x256xbf16>
    %cst_54 = arith.constant dense<0.000000e+00> : vector<16x128xf32>
    %100 = tpu.matmul %99, %98, %cst_54 {dimension_numbers = #tpu.dot_dimension_numbers<[1], [0], [0], [1], [0, 0, 1, 1], [], []>} : vector<16x256xbf16>, vector<256x128xbf16>, vector<16x128xf32> -> vector<16x128xf32>
    %c1_55 = arith.constant 1 : index
    %c0_56 = arith.constant 0 : index
    %c0_57 = arith.constant 0 : index
    %101 = vector.load %arg9[%c1_55, %c0_56, %c0_57] : memref<2x1x128xf32, #tpu.memory_space<vmem>>, vector<1x1x128xf32>
    %102 = vector.shape_cast %101 : vector<1x1x128xf32> to vector<1x128xf32>
    %103 = vector.broadcast %102 : vector<1x128xf32> to vector<16x128xf32>
    %104 = arith.addf %100, %103 : vector<16x128xf32>
    %105 = arith.addf %104, %83 : vector<16x128xf32>
    %c1_58 = arith.constant 1 : index
    %c0_59 = arith.constant 0 : index
    %c0_60 = arith.constant 0 : index
    %106 = vector.load %arg10[%c1_58, %c0_59, %c0_60] : memref<2x1x128xf32, #tpu.memory_space<vmem>>, vector<1x1x128xf32>
    %107 = vector.shape_cast %106 : vector<1x1x128xf32> to vector<1x128xf32>
    %c1_61 = arith.constant 1 : index
    %c0_62 = arith.constant 0 : index
    %c0_63 = arith.constant 0 : index
    %108 = vector.load %arg11[%c1_61, %c0_62, %c0_63] : memref<2x1x128xf32, #tpu.memory_space<vmem>>, vector<1x1x128xf32>
    %109 = vector.shape_cast %108 : vector<1x1x128xf32> to vector<1x128xf32>
    %cst_64 = arith.constant dense<0.000000e+00> : vector<16xf32>
    %110 = vector.multi_reduction <add>, %105, %cst_64 [1] : vector<16x128xf32> to vector<16xf32>
    %111 = vector.shape_cast %110 : vector<16xf32> to vector<16x1xf32>
    %cst_65 = arith.constant 1.562500e-02 : f32
    %112 = vector.broadcast %cst_65 : f32 to vector<16x1xf32>
    %113 = arith.mulf %111, %112 : vector<16x1xf32>
    %114 = arith.mulf %105, %105 : vector<16x128xf32>
    %cst_66 = arith.constant dense<0.000000e+00> : vector<16xf32>
    %115 = vector.multi_reduction <add>, %114, %cst_66 [1] : vector<16x128xf32> to vector<16xf32>
    %116 = vector.shape_cast %115 : vector<16xf32> to vector<16x1xf32>
    %cst_67 = arith.constant 1.562500e-02 : f32
    %117 = vector.broadcast %cst_67 : f32 to vector<16x1xf32>
    %118 = arith.mulf %116, %117 : vector<16x1xf32>
    %119 = arith.mulf %113, %113 : vector<16x1xf32>
    %120 = arith.subf %118, %119 : vector<16x1xf32>
    %121 = vector.broadcast %113 : vector<16x1xf32> to vector<16x128xf32>
    %122 = arith.subf %105, %121 : vector<16x128xf32>
    %cst_68 = arith.constant 9.99999974E-6 : f32
    %123 = vector.broadcast %cst_68 : f32 to vector<16x1xf32>
    %124 = arith.addf %120, %123 : vector<16x1xf32>
    %125 = math.rsqrt %124 : vector<16x1xf32>
    %126 = vector.broadcast %125 : vector<16x1xf32> to vector<16x128xf32>
    %127 = arith.mulf %122, %126 : vector<16x128xf32>
    %128 = vector.broadcast %107 : vector<1x128xf32> to vector<16x128xf32>
    %129 = arith.mulf %127, %128 : vector<16x128xf32>
    %130 = vector.broadcast %109 : vector<1x128xf32> to vector<16x128xf32>
    %131 = arith.addf %129, %130 : vector<16x128xf32>
    %c0_69 = arith.constant 0 : index
    %c0_70 = arith.constant 0 : index
    %132 = vector.load %arg12[%c0_69, %c0_70] : memref<128x128xbf16, #tpu.memory_space<vmem>>, vector<128x128xbf16>
    %133 = arith.truncf %131 : vector<16x128xf32> to vector<16x128xbf16>
    %cst_71 = arith.constant dense<0.000000e+00> : vector<16x128xf32>
    %134 = tpu.matmul %133, %132, %cst_71 {dimension_numbers = #tpu.dot_dimension_numbers<[1], [0], [0], [1], [0, 0, 1, 1], [], []>} : vector<16x128xbf16>, vector<128x128xbf16>, vector<16x128xf32> -> vector<16x128xf32>
    %c0_72 = arith.constant 0 : index
    %c0_73 = arith.constant 0 : index
    %135 = vector.load %arg13[%c0_72, %c0_73] : memref<1x128xf32, #tpu.memory_space<vmem>>, vector<1x128xf32>
    %136 = vector.broadcast %135 : vector<1x128xf32> to vector<16x128xf32>
    %137 = arith.addf %134, %136 : vector<16x128xf32>
    %138 = math.tanh %137 : vector<16x128xf32>
    %c0_74 = arith.constant 0 : index
    %c0_75 = arith.constant 0 : index
    %139 = vector.load %arg14[%c0_74, %c0_75] : memref<16x128xf32, #tpu.memory_space<vmem>>, vector<16x128xf32>
    tpu.vector_store %arg14[%c0_74, %c0_75], %138 {strides = array<i32>} : memref<16x128xf32, #tpu.memory_space<vmem>>, vector<16x128xf32>,
    return
  }
  func.func @transform_0(%arg0: i32) -> (i32, i32) {
    %c0_i32 = arith.constant 0 : i32
    %c0_i32_0 = arith.constant 0 : i32
    return %arg0, %c0_i32 : i32, i32
  }
  func.func @transform_1(%arg0: i32) -> (i32, i32) {
    %c0_i32 = arith.constant 0 : i32
    %c0_i32_0 = arith.constant 0 : i32
    %c0_i32_1 = arith.constant 0 : i32
    return %c0_i32, %c0_i32_0 : i32, i32
  }
  func.func @transform_2(%arg0: i32) -> (i32, i32) {
    %c0_i32 = arith.constant 0 : i32
    %c0_i32_0 = arith.constant 0 : i32
    %c0_i32_1 = arith.constant 0 : i32
    return %c0_i32, %c0_i32_0 : i32, i32
  }
  func.func @transform_3(%arg0: i32) -> (i32, i32) {
    %c0_i32 = arith.constant 0 : i32
    %c0_i32_0 = arith.constant 0 : i32
    %c0_i32_1 = arith.constant 0 : i32
    return %c0_i32, %c0_i32_0 : i32, i32
  }
  func.func @transform_4(%arg0: i32) -> (i32, i32) {
    %c0_i32 = arith.constant 0 : i32
    %c0_i32_0 = arith.constant 0 : i32
    %c0_i32_1 = arith.constant 0 : i32
    return %c0_i32, %c0_i32_0 : i32, i32
  }
  func.func @transform_5(%arg0: i32) -> (i32, i32, i32) {
    %c0_i32 = arith.constant 0 : i32
    %c0_i32_0 = arith.constant 0 : i32
    %c0_i32_1 = arith.constant 0 : i32
    %c0_i32_2 = arith.constant 0 : i32
    return %c0_i32, %c0_i32_0, %c0_i32_1 : i32, i32, i32
  }
  func.func @transform_6(%arg0: i32) -> (i32, i32, i32) {
    %c0_i32 = arith.constant 0 : i32
    %c0_i32_0 = arith.constant 0 : i32
    %c0_i32_1 = arith.constant 0 : i32
    %c0_i32_2 = arith.constant 0 : i32
    return %c0_i32, %c0_i32_0, %c0_i32_1 : i32, i32, i32
  }
  func.func @transform_7(%arg0: i32) -> (i32, i32, i32) {
    %c0_i32 = arith.constant 0 : i32
    %c0_i32_0 = arith.constant 0 : i32
    %c0_i32_1 = arith.constant 0 : i32
    %c0_i32_2 = arith.constant 0 : i32
    return %c0_i32, %c0_i32_0, %c0_i32_1 : i32, i32, i32
  }
  func.func @transform_8(%arg0: i32) -> (i32, i32, i32) {
    %c0_i32 = arith.constant 0 : i32
    %c0_i32_0 = arith.constant 0 : i32
    %c0_i32_1 = arith.constant 0 : i32
    %c0_i32_2 = arith.constant 0 : i32
    return %c0_i32, %c0_i32_0, %c0_i32_1 : i32, i32, i32
  }
  func.func @transform_9(%arg0: i32) -> (i32, i32, i32) {
    %c0_i32 = arith.constant 0 : i32
    %c0_i32_0 = arith.constant 0 : i32
    %c0_i32_1 = arith.constant 0 : i32
    %c0_i32_2 = arith.constant 0 : i32
    return %c0_i32, %c0_i32_0, %c0_i32_1 : i32, i32, i32
  }
  func.func @transform_10(%arg0: i32) -> (i32, i32, i32) {
    %c0_i32 = arith.constant 0 : i32
    %c0_i32_0 = arith.constant 0 : i32
    %c0_i32_1 = arith.constant 0 : i32
    %c0_i32_2 = arith.constant 0 : i32
    return %c0_i32, %c0_i32_0, %c0_i32_1 : i32, i32, i32
  }
  func.func @transform_11(%arg0: i32) -> (i32, i32) {
    %c0_i32 = arith.constant 0 : i32
    %c0_i32_0 = arith.constant 0 : i32
    %c0_i32_1 = arith.constant 0 : i32
    return %c0_i32, %c0_i32_0 : i32, i32
  }
  func.func @transform_12(%arg0: i32) -> (i32, i32) {
    %c0_i32 = arith.constant 0 : i32
    %c0_i32_0 = arith.constant 0 : i32
    %c0_i32_1 = arith.constant 0 : i32
    return %c0_i32, %c0_i32_0 : i32, i32
  }
  func.func @transform_13(%arg0: i32) -> (i32, i32) {
    %c0_i32 = arith.constant 0 : i32
    %c0_i32_0 = arith.constant 0 : i32
    return %arg0, %c0_i32 : i32, i32
  }
}

</mosaic_0001>

<bundles_post_ra>
// kernel: tpu_custom_call.1
= control target key start
LH: loop header
LB: loop body
LE: loop exit
PB: predicated region body
PF: predicated region fallthrough
CT: control target
= control target key end

     0   :  { %18 = vsyncpa [#allocation3], 0  ;;  %s1871_s0 = inlined_call_operand.hbm [shape: f32[16,16], index: 0, kind: input, shape index: {}]   ;;  %s1872_s1 = inlined_call_operand.hbm [shape: bf16[16,128], index: 1, kind: input, shape index: {}]   ;;  %s1873_s2 = inlined_call_operand.hbm [shape: f32[1,128], index: 2, kind: input, shape index: {}]   ;;  %s1874_s3 = inlined_call_operand.hbm [shape: f32[1,128], index: 3, kind: input, shape index: {}]   ;;  %s1875_s4 = inlined_call_operand.hbm [shape: f32[1,128], index: 4, kind: input, shape index: {}]   ;;  %s1876_s5 = inlined_call_operand.hbm [shape: bf16[2,128,256], index: 5, kind: input, shape index: {}]   ;;  %s1877_s6 = inlined_call_operand.vmem [shape: f32[2,1,256], index: 6, kind: input, shape index: {}]   ;;  %s1878_s7 = inlined_call_operand.hbm [shape: bf16[2,256,128], index: 7, kind: input, shape index: {}]   ;;  %s1879_s8 = inlined_call_operand.vmem [shape: f32[2,1,128], index: 8, kind: input, shape index: {}]   ;;  %s1880_s9 = inlined_call_operand.vmem [shape: f32[2,1,128], index: 9, kind: input, shape index: {}]   ;;  %s1881_s10 = inlined_call_operand.vmem [shape: f32[2,1,128], index: 10, kind: input, shape index: {}]   ;;  %s1882_s11 = inlined_call_operand.hbm [shape: bf16[128,128], index: 11, kind: input, shape index: {}]   ;;  %s1883_s12 = inlined_call_operand.vmem [shape: f32[1,128], index: 12, kind: input, shape index: {}]   ;;  %s1884_s13 = inlined_call_operand.hbm [shape: f32[16,128], index: 13, kind: output, shape index: {}]  }
   0x1   :  { %19 = vsyncpa [#allocation6], 0 }
   0x2   :  { %20 = vsyncpa [#allocation9], 0 }
   0x3   :  { %21 = vsyncpa [#allocation12], 0 }
   0x4   :  { %22 = vsyncpa [#allocation15], 0 }
   0x5   :  { %23 = vsyncpa [#allocation4], 0  ;;  %s1664_s25 = smov [#allocation5]  }
   0x6   :  { %s41_s26 = sshll.u32 %s1664_s25, 4  ;;  %s42_s26 = int_to_ptr.vmem [resolvable:$true] %s41_s26 }
   0x7   :  { %s1480_s27 = scalar_lea.vmem %s42_s26, 128  ;;  %p1485_p1 = scmp.lt.s32.totalorder %s42_s26, %s42_s26 }
   0x8   :  { %p1481_p0 = scmp.ne.s32.totalorder %s42_s26, %s1480_s27  ;;  %p1486_p2 = scmp.lt.s32.totalorder %s1480_s27, %s1480_s27 }
   0xa   :  { %p1487_p3 = por %p1486_p2, %p1485_p1 }
   0xc   :  { %p1488_p4 = pnand %p1487_p3, %p1481_p0 }
   0xe   :  { %1491 = shalt.err (!%p1488_p4)
}
   0xf   :  { %s1665_s28 = smov 64   ;;  %s1666_s29 = smov 4  }
  0x10   :  { %47 = dma.hbm_to_vmem [thread:$0]  %s1872_s1, 128, %s42_s26, [#allocation6], %s1665_s28, %s1665_s28, %s1666_s29  }
  0x11   :  { %s1667_s15 = smov [#allocation8]  }
  0x12   :  { %s64_s16 = sshll.u32 %s1667_s15, 4  ;;  %s65_s16 = int_to_ptr.vmem [resolvable:$true] %s64_s16 }
  0x13   :  { %s1500_s17 = scalar_lea.vmem %s65_s16, 16  ;;  %s1504_s18 = scalar_lea.vmem %s65_s16, 32 }
  0x14   :  { %p1501_p5 = scmp.ne.s32.totalorder %s65_s16, %s1500_s17  ;;  %p1505_p6 = scmp.lt.s32.totalorder %s65_s16, %s65_s16 }
  0x15   :  { %p1506_p7 = scmp.lt.s32.totalorder %s1504_s18, %s1500_s17 }
  0x17   :  { %p1507_p8 = por %p1506_p7, %p1505_p6 }
  0x19   :  { %p1508_p9 = pnand %p1507_p8, %p1501_p5 }
  0x1b   :  { %1511 = shalt.err (!%p1508_p9)
}
  0x1c   :  { %67 = dma.hbm_to_vmem [thread:$0]  %s1874_s3, 16, %s65_s16, [#allocation9]  }
  0x1d   :  { %s1668_s21 = smov [#allocation11]   ;;  %s1669_s23 = smov [#allocation2]  }
  0x1e   :  { %s83_s22 = sshll.u32 %s1668_s21, 4  ;;  %s29_s24 = sshll.u32 %s1669_s23, 4  ;;  %s84_s22 = int_to_ptr.vmem [resolvable:$true] %s83_s22  ;;  %s30_s24 = int_to_ptr.vmem [resolvable:$true] %s29_s24 }
  0x1f   :  { %s1520_s1 = scalar_lea.vmem %s84_s22, 4096  ;;  %p1525_p11 = scmp.lt.s32.totalorder %s84_s22, %s84_s22 }
  0x20   :  { %p1521_p10 = scmp.ne.s32.totalorder %s84_s22, %s1520_s1  ;;  %p1526_p12 = scmp.lt.s32.totalorder %s1520_s1, %s1520_s1 }
  0x22   :  { %p1527_p13 = por %p1526_p12, %p1525_p11 }
  0x24   :  { %p1528_p0 = pnand %p1527_p13, %p1521_p10 }
  0x26   :  { %1531 = shalt.err (!%p1528_p0)
}
  0x27   :  { %s1670_s25 = smov 128   ;;  %s1671_s26 = smov 8  }
  0x28   :  { %89 = dma.hbm_to_vmem [thread:$0]  %s1876_s5, 4096, %s84_s22, [#allocation12], %s1670_s25, %s1670_s25, %s1671_s26  }
  0x29   :  { %s1540_s30 = scalar_lea.vmem %s30_s24, 256  ;;  %p1545_p2 = scmp.lt.s32.totalorder %s30_s24, %s30_s24 }
  0x2a   :  { %p1541_p1 = scmp.ne.s32.totalorder %s30_s24, %s1540_s30  ;;  %p1546_p3 = scmp.lt.s32.totalorder %s1540_s30, %s1540_s30 }
  0x2c   :  { %p1547_p4 = por %p1546_p3, %p1545_p2 }
  0x2e   :  { %p1548_p5 = pnand %p1547_p4, %p1541_p1 }
  0x30   :  { %1551 = shalt.err (!%p1548_p5)
}
  0x31   :  { %35 = dma.hbm_to_vmem [thread:$0]  %s1871_s0, 256, %s30_s24, [#allocation3], %s1670_s25, %s1670_s25, %s1671_s26  }
  0x32   :  { %s1672_s16 = smov [#allocation7]   ;;  %s1673_s18 = smov [#allocation10]  }
  0x33   :  { %s54_s17 = sshll.u32 %s1672_s16, 4  ;;  %s74_s19 = sshll.u32 %s1673_s18, 4  ;;  %s55_s17 = int_to_ptr.vmem [resolvable:$true] %s54_s17  ;;  %s75_s19 = int_to_ptr.vmem [resolvable:$true] %s74_s19 }
  0x34   :  { %s1560_s5 = scalar_lea.vmem %s55_s17, 16  ;;  %s1564_s20 = scalar_lea.vmem %s55_s17, 32 }
  0x35   :  { %p1561_p6 = scmp.ne.s32.totalorder %s55_s17, %s1560_s5  ;;  %p1565_p7 = scmp.lt.s32.totalorder %s55_s17, %s55_s17 }
  0x36   :  { %p1566_p8 = scmp.lt.s32.totalorder %s1564_s20, %s1560_s5 }
  0x38   :  { %p1567_p9 = por %p1566_p8, %p1565_p7 }
  0x3a   :  { %p1568_p10 = pnand %p1567_p9, %p1561_p6 }
  0x3c   :  { %1571 = shalt.err (!%p1568_p10)
}
  0x3d   :  { %57 = dma.hbm_to_vmem [thread:$0]  %s1873_s2, 16, %s55_s17, [#allocation6]  }
  0x3e   :  { %s1580_s23 = scalar_lea.vmem %s75_s19, 16  ;;  %s1584_s0 = scalar_lea.vmem %s75_s19, 32 }
  0x3f   :  { %p1581_p11 = scmp.ne.s32.totalorder %s75_s19, %s1580_s23  ;;  %p1585_p12 = scmp.lt.s32.totalorder %s75_s19, %s75_s19 }
  0x40   :  { %p1586_p13 = scmp.lt.s32.totalorder %s1584_s0, %s1580_s23 }
  0x42   :  { %p1587_p0 = por %p1586_p13, %p1585_p12 }
  0x44   :  { %p1588_p1 = pnand %p1587_p0, %p1581_p11 }
  0x46   :  { %1591 = shalt.err (!%p1588_p1)
}
  0x47   :  { %77 = dma.hbm_to_vmem [thread:$0]  %s1875_s4, 16, %s75_s19, [#allocation9]  }
  0x48   :  { %s1674_s27 = smov [#allocation13]   ;;  %s1675_s30 = smov [#allocation14]  }
  0x49   :  { %s97_s3 = sshll.u32 %s1674_s27, 4  ;;  %s115_s14 = sshll.u32 %s1675_s30, 4  ;;  %s98_s3 = int_to_ptr.vmem [resolvable:$true] %s97_s3  ;;  %s116_s14 = int_to_ptr.vmem [resolvable:$true] %s115_s14 }
  0x4a   :  { %s1600_s15 = scalar_lea.vmem %s98_s3, 4096  ;;  %p1605_p3 = scmp.lt.s32.totalorder %s98_s3, %s98_s3 }
  0x4b   :  { %p1601_p2 = scmp.ne.s32.totalorder %s98_s3, %s1600_s15  ;;  %p1606_p4 = scmp.lt.s32.totalorder %s1600_s15, %s1600_s15 }
  0x4d   :  { %p1607_p5 = por %p1606_p4, %p1605_p3 }
  0x4f   :  { %p1608_p6 = pnand %p1607_p5, %p1601_p2 }
  0x51   :  { %1611 = shalt.err (!%p1608_p6)
}
  0x52   :  { %103 = dma.hbm_to_vmem [thread:$0]  %s1878_s7, 4096, %s98_s3, [#allocation12], %s1665_s28, %s1665_s28, %s1666_s29  }
  0x53   :  { %s1620_s4 = scalar_lea.vmem %s116_s14, 1024  ;;  %p1625_p8 = scmp.lt.s32.totalorder %s116_s14, %s116_s14 }
  0x54   :  { %p1621_p7 = scmp.ne.s32.totalorder %s116_s14, %s1620_s4  ;;  %p1626_p9 = scmp.lt.s32.totalorder %s1620_s4, %s1620_s4 }
  0x56   :  { %p1627_p10 = por %p1626_p9, %p1625_p8 }
  0x58   :  { %p1628_p11 = pnand %p1627_p10, %p1621_p7 }
  0x5a   :  { %1631 = shalt.err (!%p1628_p11)
}
  0x5b   :  { %121 = dma.hbm_to_vmem [thread:$0]  %s1882_s11, 1024, %s116_s14, [#allocation15], %s1665_s28, %s1665_s28, %s1666_s29  }
  0x5c   :  { %1652 = dma.done.wait [#allocation3], 256  }
  0x5d   :  { %1653 = vsyncadd [#allocation3], 4294967040 }
  0x5e   :  { %1654 = dma.done.wait [#allocation6], 144  }
  0x5f   :  { %1655 = vsyncadd [#allocation6], 4294967152 }
  0x60   :  { %1656 = dma.done.wait [#allocation9], 32  }
  0x61   :  { %1657 = vsyncadd [#allocation9], 4294967264 }
  0x62   :  { %1658 = dma.done.wait [#allocation12], 8192  }
  0x63   :  { %1659 = vsyncadd [#allocation12], 4294959104 }
  0x64   :  { %1660 = dma.done.wait [#allocation15], 1024  }
  0x65   :  { %1661 = vsyncadd [#allocation15], 4294966272  ;;  %v1676_v0 = vmov 0.0   ;;  %vm1677_vm0 = vmmov 0   ;;  %v1367_v1 = vld [vmem:[#allocation5] sm:$0xff]   ;;  %v149_v2 = vld [vmem:[#allocation2] sm:$0xff] }
  0x66   :  { %1325 = vmatprep.subr.bf16.mxu0 %v1676_v0  ;;  %1327 = vmatprep.mubr.msk.bf16.mxu0 %vm1677_vm0, %v1676_v0  ;;  %v150_v3 = vld [vmem:[#allocation2 + $0x8] sm:$0xff]  ;;  %vm167_vm1 = vcmask 130048   ;;  %v1182_v5 = vld [vmem:[#allocation7] ss:$0 sm:$0xff]  ;;  %v1368_v18 = vld [vmem:[#allocation11 + $0x74] ss:$8 sps:$4 sm:$0xff]  }
  0x67   :  { %1326 = vmatpush3.bf16.msra.mxu0 %v1367_v1  ;;  %v153_v4 = vpack.c.bf16 %v150_v3, %v149_v2  ;;  %v1370_v19 = vld [vmem:[#allocation11 + $0x70] ss:$8 sps:$4 sm:$0xff]   ;;  %371 = vmatprep.subr.bf16.mxu1 %v1368_v18  ;;  %v1371_v20 = vld [vmem:[#allocation11 + $0x64] ss:$8 sps:$4 sm:$0xff]   ;;  %v1373_v21 = vld [vmem:[#allocation11 + $0x60] ss:$8 sps:$4 sm:$0xff]  }
  0x68   :  { %372 = vmatpush1.bf16.msra.mxu1 %v1370_v19  ;;  %v1374_v22 = vld [vmem:[#allocation11 + $0x54] ss:$8 sps:$4 sm:$0xff]   ;;  %v1376_v23 = vld [vmem:[#allocation11 + $0x50] ss:$8 sps:$4 sm:$0xff]   ;;  %v1377_v24 = vld [vmem:[#allocation11 + $0x44] ss:$8 sps:$4 sm:$0xff]  }
  0x69   :  { %373 = vmatprep.subr.bf16.mxu1 %v1371_v20  ;;  %v1379_v25 = vld [vmem:[#allocation11 + $0x40] ss:$8 sps:$4 sm:$0xff]   ;;  %v1380_v26 = vld [vmem:[#allocation11 + $0x34] ss:$8 sps:$4 sm:$0xff]   ;;  %v1382_v27 = vld [vmem:[#allocation11 + $0x30] ss:$8 sps:$4 sm:$0xff]  }
  0x6a   :  { %1328 = vmatmul.mubr.msk.bf16.vlgmr.msra.gmra.mxu0 %vm167_vm1, %v153_v4  ;;  %v1383_v28 = vld [vmem:[#allocation11 + $0x24] ss:$8 sps:$4 sm:$0xff]   ;;  %v1678_v29 = vmov 0   ;;  %v1385_v30 = vld [vmem:[#allocation11 + $0x20] ss:$8 sps:$4 sm:$0xff]   ;;  %v1392_v35 = vld [vmem:[#allocation13 + $0x78] sm:$0xff]  }
  0x6b   :  { %403 = vmatprep.mubr.bf16.mxu1 %v1678_v29  ;;  %v1386_v31 = vld [vmem:[#allocation11 + $0x14] ss:$8 sps:$4 sm:$0xff]   ;;  %v1388_v32 = vld [vmem:[#allocation11 + $0x10] ss:$8 sps:$4 sm:$0xff]   ;;  %v1389_v33 = vld [vmem:[#allocation11 + $0x4] ss:$8 sps:$4 sm:$0xff]   ;;  %1272 = vmatprep.subr.bf16.mxu0 %v1392_v35 }
  0x6c   :  { %374 = vmatpush1.bf16.msra.mxu1 %v1373_v21  ;;  %v1391_v34 = vld [vmem:[#allocation11] ss:$8 sps:$4 sm:$0xff]   ;;  %v1393_v36 = vld [vmem:[#allocation13 + $0x38] sm:$0xff]   ;;  %v1394_v37 = vld [vmem:[#allocation13 + $0x70] sm:$0xff]  }
  0x6d   :  { %375 = vmatprep.subr.bf16.mxu1 %v1374_v22  ;;  %1273 = vmatpush3.bf16.msra.mxu0 %v1393_v36  ;;  %v1395_v38 = vld [vmem:[#allocation13 + $0x30] sm:$0xff]   ;;  %v1396_v39 = vld [vmem:[#allocation13 + $0x68] sm:$0xff]   ;;  %v1398_v41 = vld [vmem:[#allocation13 + $0x60] sm:$0xff]  }
  0x6e   :  { %1274 = vmatprep.subr.bf16.mxu0 %v1394_v37  ;;  %v1397_v40 = vld [vmem:[#allocation13 + $0x28] sm:$0xff]   ;;  %v1399_v42 = vld [vmem:[#allocation13 + $0x20] sm:$0xff]   ;;  %v1400_v43 = vld [vmem:[#allocation13 + $0x58] sm:$0xff]  }
  0x6f   :  { %v1185_v61 = vld [vmem:[#allocation8] ss:$0 sm:$0xff]  ;;  %v1186_v3 = vld [vmem:[#allocation10] ss:$0 sm:$0xff]  ;;  %v279_v19 = vld [vmem:[%s1877_s6] sm:$0x3] }
  0x70   :  { %376 = vmatpush1.bf16.msra.mxu1 %v1376_v23 }
  0x71   :  { %377 = vmatprep.subr.bf16.mxu1 %v1377_v24  ;;  %1275 = vmatpush3.bf16.msra.mxu0 %v1395_v38 }
  0x72   :  { %1276 = vmatprep.subr.bf16.mxu0 %v1396_v39 }
  0x74   :  { %378 = vmatpush1.bf16.msra.mxu1 %v1379_v25 }
  0x75   :  { %379 = vmatprep.subr.bf16.mxu1 %v1380_v26  ;;  %1277 = vmatpush3.bf16.msra.mxu0 %v1397_v40 }
  0x76   :  { %1278 = vmatprep.subr.bf16.mxu0 %v1398_v41  ;;  %v1203_v41 = vld [vmem:[%s1879_s8] ss:$0 sm:$0xff] }
  0x78   :  { %380 = vmatpush1.bf16.msra.mxu1 %v1382_v27 }
  0x79   :  { %381 = vmatprep.subr.bf16.mxu1 %v1383_v28  ;;  %1279 = vmatpush3.bf16.msra.mxu0 %v1399_v42 }
  0x7a   :  { %1280 = vmatprep.subr.bf16.mxu0 %v1400_v43 }
  0x7c   :  { %382 = vmatpush1.bf16.msra.mxu1 %v1385_v30 }
  0x7d   :  { %383 = vmatprep.subr.bf16.mxu1 %v1386_v31 }
  0x80   :  { %384 = vmatpush1.bf16.msra.mxu1 %v1388_v32 }
  0x81   :  { %385 = vmatprep.subr.bf16.mxu1 %v1389_v33 }
  0x84   :  { %386 = vmatpush1.bf16.msra.mxu1 %v1391_v34 }
 0x12a   :  { %v205_v6 = vpop.f32.mrf.mxu0 }
 0x12b   :  { %v206_v7 = vadd.f32 %v1182_v5, %v205_v6 }
 0x12c   :  { %v1329_v8 = vpop.f32.mrf.mxu0 }
 0x12d   :  { %v214_v9 = vmul.f32 0.2, %v206_v7  ;;  %vm212_vm2 = vcmp.ge.f32.partialorder %v206_v7, 0.0  ;;  %v1401_v8 = vld [vmem:[#allocation13 + $0x18] sm:$0xff]  }
 0x12e   :  { %v208_v10 = vpop.f32.mrf.mxu0  ;;  %1281 = vmatpush3.bf16.msra.mxu0 %v1401_v8  ;;  %v1434_v8 = vld [vmem:[#allocation13 + $0xf0] sm:$0xff]  }
 0x12f   :  { %v209_v11 = vadd.f32 %v1182_v5, %v208_v10  ;;  %v1792_v12 = vsel %vm212_vm2, %v206_v7, %v214_v9  ;;  %v1402_v9 = vld [vmem:[#allocation13 + $0x50] sm:$0xff]  }
 0x130   :  { %220 = vadd.xlane.f32.xlu0 %v1792_v12  ;;  %v1330_v13 = vpop.f32.mrf.mxu0  ;;  %v226_v14 = vmul.f32 %v1792_v12, %v1792_v12  ;;  %v1403_v10 = vld [vmem:[#allocation13 + $0x10] sm:$0xff]   ;;  %1282 = vmatprep.subr.bf16.mxu0 %v1402_v9 }
 0x131   :  { %v215_v15 = vmul.f32 0.2, %v209_v11  ;;  %vm213_vm3 = vcmp.ge.f32.partialorder %v209_v11, 0.0  ;;  %v1406_v13 = vld [vmem:[#allocation13 + $0x40] sm:$0xff]   ;;  %v1435_v9 = vld [vmem:[#allocation13 + $0xb0] sm:$0xff]  }
 0x132   :  { %228 = vadd.xlane.f32.xlu1 %v226_v14  ;;  %1283 = vmatpush3.bf16.msra.mxu0 %v1403_v10  ;;  %v1407_v14 = vld [vmem:[#allocation13] sm:$0xff]   ;;  %v1436_v10 = vld [vmem:[#allocation13 + $0xe8] sm:$0xff]  }
 0x133   :  { %v1797_v16 = vsel %vm213_vm3, %v209_v11, %v215_v15  ;;  %v1404_v11 = vld [vmem:[#allocation13 + $0x48] sm:$0xff]   ;;  %v281_v15 = vlaneseq }
 0x134   :  { %222 = vadd.xlane.f32.xlu0 %v1797_v16  ;;  %v227_v17 = vmul.f32 %v1797_v16, %v1797_v16  ;;  %1284 = vmatprep.subr.bf16.mxu0 %v1404_v11  ;;  %v1437_v11 = vld [vmem:[#allocation13 + $0xa8] sm:$0xff]  }
 0x136   :  { %230 = vadd.xlane.f32.xlu1 %v227_v17 }
 0x1b9   :  { %v221_v44 = vpop.xlane.xlu0 %220 }
 0x1ba   :  { %v224_v45 = vmul.f32 0.015625, %v221_v44 }
 0x1bb   :  { %v229_v46 = vpop.xlane.xlu1 %228 }
 0x1bc   :  { %v234_v47 = vmul.f32 %v224_v45, %v224_v45  ;;  %v232_v48 = vmul.f32 0.015625, %v229_v46  ;;  %v238_v58 = vsub.f32 %v1792_v12, %v224_v45  ;;  %v1405_v12 = vld [vmem:[#allocation13 + $0x8] sm:$0xff]  }
 0x1bd   :  { %v223_v49 = vpop.xlane.xlu0 %222  ;;  %1285 = vmatpush3.bf16.msra.mxu0 %v1405_v12  ;;  %v1438_v12 = vld [vmem:[#allocation13 + $0xe0] sm:$0xff]  }
 0x1be   :  { %v236_v50 = vsub.f32 %v232_v48, %v234_v47  ;;  %v225_v51 = vmul.f32 0.015625, %v223_v49  ;;  %1286 = vmatprep.subr.bf16.mxu0 %v1406_v13  ;;  %v1439_v13 = vld [vmem:[#allocation13 + $0xa0] sm:$0xff]  }
 0x1bf   :  { %v231_v52 = vpop.xlane.xlu1 %230 }
 0x1c0   :  { %v240_v53 = vadd.f32 1e-05, %v236_v50  ;;  %v235_v54 = vmul.f32 %v225_v51, %v225_v51  ;;  %v233_v55 = vmul.f32 0.015625, %v231_v52  ;;  %v239_v62 = vsub.f32 %v1797_v16, %v225_v51 }
 0x1c1   :  { %1287 = vmatpush3.bf16.msra.mxu0 %v1407_v14  ;;  %v1804_v16 = vshrl.u32 %v281_v15, 7  ;;  %v1440_v14 = vld [vmem:[#allocation13 + $0xd8] sm:$0xff]  }
 0x1c2   :  { %1456 = vrsqrt.f32 %v240_v53  ;;  %v237_v56 = vsub.f32 %v233_v55, %v235_v54  ;;  %v1410_v53 = vld [vmem:[#allocation11 + $0xf4] ss:$8 sps:$4 sm:$0xff]   ;;  %v1408_v54 = vld [vmem:[#allocation11 + $0xf0] ss:$8 sps:$4 sm:$0xff]   ;;  %v1413_v55 = vld [vmem:[#allocation11 + $0xe4] ss:$8 sps:$4 sm:$0xff]  }
 0x1c3   :  { %v287_v17 = vsub.s32 1, %v1804_v16  ;;  %v283_v18 = vsub.s32 0, %v1804_v16  ;;  %761 = vmatprep.subr.bf16.mxu1 %v1410_v53 }
 0x1c4   :  { %v241_v57 = vadd.f32 1e-05, %v237_v56  ;;  %v1411_v56 = vld [vmem:[#allocation11 + $0xe0] ss:$8 sps:$4 sm:$0xff]  }
 0x1c5   :  { %v288_v20 = vrot.slane %v279_v19, %v287_v17  ;;  %v284_v21 = vrot.slane %v279_v19, %v283_v18 }
 0x1c6   :  { %1458 = vrsqrt.f32 %v241_v57  ;;  %v1416_v57 = vld [vmem:[#allocation11 + $0xd4] ss:$8 sps:$4 sm:$0xff]  }
 0x1cf   :  { %v1457_v59 = vpop.eup %1456 }
 0x1d0   :  { %v244_v60 = vmul.f32 %v1457_v59, %v238_v58  ;;  %v1414_v58 = vld [vmem:[#allocation11 + $0xd0] ss:$8 sps:$4 sm:$0xff]   ;;  %v1417_v59 = vld [vmem:[#allocation11 + $0xc0] ss:$8 sps:$4 sm:$0xff]  }
 0x1d2   :  { %v252_v2 = vmul.f32 %v1185_v61, %v244_v60  ;;  %v1419_v60 = vld [vmem:[#allocation11 + $0xc4] ss:$8 sps:$4 sm:$0xff]  }
 0x1d3   :  { %v1459_v63 = vpop.eup %1458 }
 0x1d4   :  { %v245_v1 = vmul.f32 %v1459_v63, %v239_v62  ;;  %v260_v5 = vadd.f32 %v1186_v3, %v252_v2  ;;  %v1420_v62 = vld [vmem:[#allocation11 + $0xb0] ss:$8 sps:$4 sm:$0xff]   ;;  %v1425_v63 = vld [vmem:[#allocation11 + $0xa4] ss:$8 sps:$4 sm:$0xff]   ;;  %v1428_v2 = vld [vmem:[#allocation11 + $0x94] ss:$8 sps:$4 sm:$0xff]  }
 0x1d6   :  { %v253_v4 = vmul.f32 %v1185_v61, %v245_v1  ;;  %v1422_v61 = vld [vmem:[#allocation11 + $0xb4] ss:$8 sps:$4 sm:$0xff]   ;;  %v1423_v1 = vld [vmem:[#allocation11 + $0xa0] ss:$8 sps:$4 sm:$0xff]  }
 0x1d8   :  { %v261_v6 = vadd.f32 %v1186_v3, %v253_v4  ;;  %v1426_v3 = vld [vmem:[#allocation11 + $0x90] ss:$8 sps:$4 sm:$0xff]   ;;  %v1431_v4 = vld [vmem:[#allocation11 + $0x84] ss:$8 sps:$4 sm:$0xff]  }
 0x1da   :  { %v278_v7 = vpack.c.bf16 %v261_v6, %v260_v5 }
 0x1dc   :  { %404 = vmatmul.mubr.bf16.vlgmr.msra.gmra.mxu1 %v278_v7  ;;  %v1433_v7 = vld [vmem:[#allocation13 + $0xb8] sm:$0xff]  }
 0x1dd   :  { %793 = vmatprep.mubr.bf16.mxu1 %v1678_v29  ;;  %762 = vmatpush1.bf16.msra.mxu1 %v1408_v54 }
 0x1de   :  { %763 = vmatprep.subr.bf16.mxu1 %v1413_v55 }
 0x1e1   :  { %764 = vmatpush1.bf16.msra.mxu1 %v1411_v56 }
 0x1e2   :  { %765 = vmatprep.subr.bf16.mxu1 %v1416_v57 }
 0x1e5   :  { %766 = vmatpush1.bf16.msra.mxu1 %v1414_v58 }
 0x1e6   :  { %767 = vmatprep.subr.bf16.mxu1 %v1419_v60 }
 0x1e9   :  { %768 = vmatpush1.bf16.msra.mxu1 %v1417_v59 }
 0x1ea   :  { %769 = vmatprep.subr.bf16.mxu1 %v1422_v61 }
 0x1ed   :  { %770 = vmatpush1.bf16.msra.mxu1 %v1420_v62 }
 0x1ee   :  { %771 = vmatprep.subr.bf16.mxu1 %v1425_v63 }
 0x1f1   :  { %772 = vmatpush1.bf16.msra.mxu1 %v1423_v1 }
 0x1f2   :  { %773 = vmatprep.subr.bf16.mxu1 %v1428_v2 }
 0x1f5   :  { %774 = vmatpush1.bf16.msra.mxu1 %v1426_v3 }
 0x1f6   :  { %775 = vmatprep.subr.bf16.mxu1 %v1431_v4 }
 0x29c   :  { %v405_v22 = vpop.f32.mrf.mxu1 }
 0x29d   :  { %v406_v25 = vadd.f32 %v405_v22, %v284_v21 }
 0x29e   :  { %v407_v23 = vpop.f32.mrf.mxu1 }
 0x29f   :  { %v408_v24 = vadd.f32 %v407_v23, %v288_v20  ;;  %v418_v32 = vmul.f32 0.1, %v406_v25  ;;  %vm414_vm6 = vcmp.ge.f32.partialorder %v406_v25, 0.0 }
 0x2a0   :  { %v409_v26 = vpop.f32.mrf.mxu1 }
 0x2a1   :  { %v410_v27 = vadd.f32 %v409_v26, %v284_v21  ;;  %v419_v29 = vmul.f32 0.1, %v408_v24  ;;  %vm415_vm5 = vcmp.ge.f32.partialorder %v408_v24, 0.0  ;;  %v422_v37 = vsel %vm414_vm6, %v406_v25, %v418_v32 }
 0x2a2   :  { %v411_v28 = vpop.f32.mrf.mxu1 }
 0x2a3   :  { %vm416_vm4 = vcmp.ge.f32.partialorder %v410_v27, 0.0  ;;  %v420_v30 = vmul.f32 0.1, %v410_v27  ;;  %v412_v31 = vadd.f32 %v411_v28, %v288_v20  ;;  %v423_v35 = vsel %vm415_vm5, %v408_v24, %v419_v29 }
 0x2a5   :  { %vm417_vm7 = vcmp.ge.f32.partialorder %v412_v31, 0.0  ;;  %v421_v33 = vmul.f32 0.1, %v412_v31  ;;  %v424_v34 = vsel %vm416_vm4, %v410_v27, %v420_v30 }
 0x2a6   :  { %v458_v39 = vpack.c.bf16 %v424_v34, %v422_v37 }
 0x2a7   :  { %v425_v36 = vsel %vm417_vm7, %v412_v31, %v421_v33 }
 0x2a8   :  { %v459_v38 = vpack.c.bf16 %v425_v36, %v423_v35  ;;  %v1220_v35 = vld [vmem:[%s1880_s9] ss:$0 sm:$0xff] }
 0x2aa   :  { %595 = vmatprep.mubr.bf16.mxu0 %v459_v38 }
 0x2ab   :  { %596 = vmatmul.mubr.bf16.vlgmr.msra.gmra.mxu0 %v458_v39 }
 0x36b   :  { %v1288_v40 = vpop.f32.mrf.mxu0 }
 0x36d   :  { %v1289_v42 = vpop.f32.mrf.mxu0 }
 0x36e   :  { %v1290_v43 = vadd.f32 %v1289_v42, %v1288_v40  ;;  %v1221_v40 = vld [vmem:[%s1881_s10] ss:$0 sm:$0xff] }
 0x36f   :  { %v1291_v44 = vpop.f32.mrf.mxu0 }
 0x370   :  { %v598_v45 = vadd.f32 %v1290_v43, %v1203_v41 }
 0x371   :  { %v1292_v46 = vpop.f32.mrf.mxu0 }
 0x372   :  { %v1293_v47 = vadd.f32 %v1292_v46, %v1291_v44  ;;  %v1818_v48 = vadd.f32 %v598_v45, %v260_v5  ;;  %v1429_v5 = vld [vmem:[#allocation11 + $0x80] ss:$8 sps:$4 sm:$0xff]   ;;  %v1441_v45 = vld [vmem:[#allocation13 + $0x98] sm:$0xff]   ;;  %v1442_v46 = vld [vmem:[#allocation13 + $0xd0] sm:$0xff]  }
 0x373   :  { %776 = vmatpush1.bf16.msra.mxu1 %v1429_v5 }
 0x374   :  { %v601_v49 = vadd.f32 %v1293_v47, %v1203_v41  ;;  %608 = vadd.xlane.f32.xlu0 %v1818_v48  ;;  %v614_v51 = vmul.f32 %v1818_v48, %v1818_v48  ;;  %1331 = vmatprep.subr.bf16.mxu1 %v1676_v0  ;;  %v1443_v47 = vld [vmem:[#allocation13 + $0x90] sm:$0xff]  }
 0x376   :  { %v1821_v50 = vadd.f32 %v601_v49, %v261_v6  ;;  %v1432_v6 = vld [vmem:[#allocation13 + $0xf8] sm:$0xff]   ;;  %v1445_v49 = vld [vmem:[#allocation13 + $0x88] sm:$0xff]  }
 0x377   :  { %1294 = vmatprep.subr.bf16.mxu0 %v1432_v6 }
 0x378   :  { %610 = vadd.xlane.f32.xlu1 %v1821_v50  ;;  %616 = vadd.xlane.f32.xlu0 %v614_v51  ;;  %v615_v52 = vmul.f32 %v1821_v50, %v1821_v50  ;;  %v1447_v51 = vld [vmem:[#allocation13 + $0x80] sm:$0xff]  }
 0x379   :  { %1295 = vmatpush3.bf16.msra.mxu0 %v1433_v7 }
 0x37a   :  { %1296 = vmatprep.subr.bf16.mxu0 %v1434_v8  ;;  %v1240_v8 = vld [vmem:[%s1879_s8 + $0x1] ss:$0 sm:$0xff] }
 0x37c   :  { %618 = vadd.xlane.f32.xlu1 %v615_v52  ;;  %v1222_v52 = vld [vmem:[%s1877_s6 + $0x2] sm:$0x3] }
 0x37d   :  { %1297 = vmatpush3.bf16.msra.mxu0 %v1435_v9  ;;  %v678_v53 = vrot.slane %v1222_v52, %v287_v17  ;;  %v674_v54 = vrot.slane %v1222_v52, %v283_v18  ;;  %v1260_v52 = vld [vmem:[%s1881_s10 + $0x1] ss:$0 sm:$0xff] }
 0x37e   :  { %1298 = vmatprep.subr.bf16.mxu0 %v1436_v10 }
 0x381   :  { %1299 = vmatpush3.bf16.msra.mxu0 %v1437_v11 }
 0x382   :  { %1300 = vmatprep.subr.bf16.mxu0 %v1438_v12 }
 0x385   :  { %1301 = vmatpush3.bf16.msra.mxu0 %v1439_v13 }
 0x386   :  { %1302 = vmatprep.subr.bf16.mxu0 %v1440_v14 }
 0x389   :  { %1303 = vmatpush3.bf16.msra.mxu0 %v1441_v45 }
 0x38a   :  { %1304 = vmatprep.subr.bf16.mxu0 %v1442_v46 }
 0x38d   :  { %1305 = vmatpush3.bf16.msra.mxu0 %v1443_v47  ;;  %v1259_v47 = vld [vmem:[%s1880_s9 + $0x1] ss:$0 sm:$0xff]  ;;  %s1679_s9 = smov [#allocation16]  }
 0x38e   :  { %s1166_s10 = sshll.u32 %s1679_s9, 4  ;;  %s1167_s10 = int_to_ptr.vmem [resolvable:$true] %s1166_s10 }
 0x38f   :  { %s1632_s14 = scalar_lea.vmem %s1167_s10, 256  ;;  %p1637_p13 = scmp.lt.s32.totalorder %s1167_s10, %s1167_s10 }
 0x390   :  { %p1633_p12 = scmp.ne.s32.totalorder %s1167_s10, %s1632_s14  ;;  %p1638_p0 = scmp.lt.s32.totalorder %s1632_s14, %s1632_s14 }
 0x392   :  { %p1639_p1 = por %p1638_p0, %p1637_p13 }
 0x394   :  { %p1640_p2 = pnand %p1639_p1, %p1633_p12 }
 0x3fd   :  { %v609_v15 = vpop.xlane.xlu0 %608 }
 0x3fe   :  { %v612_v19 = vmul.f32 0.015625, %v609_v15 }
 0x400   :  { %v622_v22 = vmul.f32 %v612_v19, %v612_v19  ;;  %v626_v32 = vsub.f32 %v1818_v48, %v612_v19  ;;  %v1444_v48 = vld [vmem:[#allocation13 + $0xc8] sm:$0xff]  }
 0x401   :  { %v611_v20 = vpop.xlane.xlu1 %610  ;;  %v617_v21 = vpop.xlane.xlu0 %616  ;;  %1306 = vmatprep.subr.bf16.mxu0 %v1444_v48 }
 0x402   :  { %v613_v23 = vmul.f32 0.015625, %v611_v20  ;;  %v620_v24 = vmul.f32 0.015625, %v617_v21  ;;  %1307 = vmatpush3.bf16.msra.mxu0 %v1445_v49 }
 0x404   :  { %v624_v25 = vsub.f32 %v620_v24, %v622_v22  ;;  %v623_v27 = vmul.f32 %v613_v23, %v613_v23  ;;  %v627_v36 = vsub.f32 %v1821_v50, %v613_v23  ;;  %v1446_v50 = vld [vmem:[#allocation13 + $0xc0] sm:$0xff]   ;;  %v1448_v23 = vld [vmem:[#allocation14 + $0x38] sm:$0xff]   ;;  %v1449_v24 = vld [vmem:[#allocation14 + $0x30] sm:$0xff]  }
 0x405   :  { %v619_v26 = vpop.xlane.xlu1 %618  ;;  %1308 = vmatprep.subr.bf16.mxu0 %v1446_v50 }
 0x406   :  { %v628_v28 = vadd.f32 1e-05, %v624_v25  ;;  %v621_v29 = vmul.f32 0.015625, %v619_v26  ;;  %1309 = vmatpush3.bf16.msra.mxu0 %v1447_v51  ;;  %v1450_v25 = vld [vmem:[#allocation14 + $0x28] sm:$0xff]   ;;  %v1451_v26 = vld [vmem:[#allocation14 + $0x20] sm:$0xff]  }
 0x408   :  { %1460 = vrsqrt.f32 %v628_v28  ;;  %v625_v30 = vsub.f32 %v621_v29, %v623_v27  ;;  %v1452_v27 = vld [vmem:[#allocation14 + $0x18] sm:$0xff]   ;;  %v1453_v28 = vld [vmem:[#allocation14 + $0x10] sm:$0xff]   ;;  %v1454_v29 = vld [vmem:[#allocation14 + $0x8] sm:$0xff]  }
 0x40a   :  { %v629_v31 = vadd.f32 1e-05, %v625_v30  ;;  %v1455_v30 = vld [vmem:[#allocation14] sm:$0xff]  }
 0x40c   :  { %1462 = vrsqrt.f32 %v629_v31 }
 0x415   :  { %v1461_v33 = vpop.eup %1460 }
 0x416   :  { %v632_v34 = vmul.f32 %v1461_v33, %v626_v32 }
 0x418   :  { %v640_v39 = vmul.f32 %v1220_v35, %v632_v34 }
 0x419   :  { %v1463_v37 = vpop.eup %1462 }
 0x41a   :  { %v633_v38 = vmul.f32 %v1463_v37, %v627_v36  ;;  %v648_v42 = vadd.f32 %v1221_v40, %v640_v39 }
 0x41c   :  { %v641_v41 = vmul.f32 %v1220_v35, %v633_v38 }
 0x41e   :  { %v649_v43 = vadd.f32 %v1221_v40, %v641_v41 }
 0x420   :  { %v667_v44 = vpack.c.bf16 %v649_v43, %v648_v42 }
 0x422   :  { %794 = vmatmul.mubr.bf16.vlgmr.msra.gmra.mxu1 %v667_v44 }
 0x423   :  { %1347 = vmatprep.mubr.msk.bf16.mxu1 %vm1677_vm0, %v1676_v0  ;;  %1332 = vmatpush3.bf16.msra.mxu1 %v1448_v23 }
 0x424   :  { %1333 = vmatprep.subr.bf16.mxu1 %v1676_v0 }
 0x427   :  { %1334 = vmatpush3.bf16.msra.mxu1 %v1449_v24 }
 0x428   :  { %1335 = vmatprep.subr.bf16.mxu1 %v1676_v0 }
 0x42b   :  { %1336 = vmatpush3.bf16.msra.mxu1 %v1450_v25 }
 0x42c   :  { %1337 = vmatprep.subr.bf16.mxu1 %v1676_v0 }
 0x42f   :  { %1338 = vmatpush3.bf16.msra.mxu1 %v1451_v26 }
 0x430   :  { %1339 = vmatprep.subr.bf16.mxu1 %v1676_v0 }
 0x433   :  { %1340 = vmatpush3.bf16.msra.mxu1 %v1452_v27 }
 0x434   :  { %1341 = vmatprep.subr.bf16.mxu1 %v1676_v0 }
 0x437   :  { %1342 = vmatpush3.bf16.msra.mxu1 %v1453_v28 }
 0x438   :  { %1343 = vmatprep.subr.bf16.mxu1 %v1676_v0 }
 0x43b   :  { %1344 = vmatpush3.bf16.msra.mxu1 %v1454_v29 }
 0x43c   :  { %1345 = vmatprep.subr.bf16.mxu1 %v1676_v0 }
 0x43f   :  { %1346 = vmatpush3.bf16.msra.mxu1 %v1455_v30 }
 0x4e2   :  { %v795_v55 = vpop.f32.mrf.mxu1 }
 0x4e3   :  { %v796_v58 = vadd.f32 %v795_v55, %v674_v54 }
 0x4e4   :  { %v797_v56 = vpop.f32.mrf.mxu1 }
 0x4e5   :  { %v798_v57 = vadd.f32 %v797_v56, %v678_v53  ;;  %v808_v2 = vmul.f32 0.1, %v796_v58  ;;  %vm804_vm10 = vcmp.ge.f32.partialorder %v796_v58, 0.0 }
 0x4e6   :  { %v799_v59 = vpop.f32.mrf.mxu1 }
 0x4e7   :  { %v800_v60 = vadd.f32 %v799_v59, %v674_v54  ;;  %v809_v62 = vmul.f32 0.1, %v798_v57  ;;  %vm805_vm9 = vcmp.ge.f32.partialorder %v798_v57, 0.0  ;;  %v812_v18 = vsel %vm804_vm10, %v796_v58, %v808_v2 }
 0x4e8   :  { %v801_v61 = vpop.f32.mrf.mxu1 }
 0x4e9   :  { %vm806_vm8 = vcmp.ge.f32.partialorder %v800_v60, 0.0  ;;  %v810_v63 = vmul.f32 0.1, %v800_v60  ;;  %v802_v1 = vadd.f32 %v801_v61, %v678_v53  ;;  %v813_v4 = vsel %vm805_vm9, %v798_v57, %v809_v62  ;;  %v1261_v57 = vld [vmem:[%s1883_s12] ss:$0 sm:$0xff] }
 0x4eb   :  { %vm807_vm11 = vcmp.ge.f32.partialorder %v802_v1, 0.0  ;;  %v811_v3 = vmul.f32 0.1, %v802_v1  ;;  %v814_v17 = vsel %vm806_vm8, %v800_v60, %v810_v63 }
 0x4ec   :  { %v849_v6 = vpack.c.bf16 %v814_v17, %v812_v18 }
 0x4ed   :  { %v815_v16 = vsel %vm807_vm11, %v802_v1, %v811_v3 }
 0x4ee   :  { %v850_v5 = vpack.c.bf16 %v815_v16, %v813_v4 }
 0x4f0   :  { %987 = vmatprep.mubr.bf16.mxu0 %v850_v5 }
 0x4f1   :  { %988 = vmatmul.mubr.bf16.vlgmr.msra.gmra.mxu0 %v849_v6 }
 0x5b1   :  { %v1310_v7 = vpop.f32.mrf.mxu0 }
 0x5b3   :  { %v1311_v9 = vpop.f32.mrf.mxu0 }
 0x5b4   :  { %v1312_v10 = vadd.f32 %v1311_v9, %v1310_v7 }
 0x5b5   :  { %v1313_v11 = vpop.f32.mrf.mxu0 }
 0x5b6   :  { %v990_v12 = vadd.f32 %v1312_v10, %v1240_v8 }
 0x5b7   :  { %v1314_v13 = vpop.f32.mrf.mxu0 }
 0x5b8   :  { %v1315_v14 = vadd.f32 %v1314_v13, %v1313_v11  ;;  %v996_v15 = vadd.f32 %v990_v12, %v648_v42 }
 0x5ba   :  { %v993_v19 = vadd.f32 %v1315_v14, %v1240_v8  ;;  %1002 = vadd.xlane.f32.xlu0 %v996_v15  ;;  %v1008_v21 = vmul.f32 %v996_v15, %v996_v15 }
 0x5bc   :  { %v997_v20 = vadd.f32 %v993_v19, %v649_v43 }
 0x5be   :  { %1004 = vadd.xlane.f32.xlu1 %v997_v20  ;;  %1010 = vadd.xlane.f32.xlu0 %v1008_v21  ;;  %v1009_v22 = vmul.f32 %v997_v20, %v997_v20 }
 0x5c2   :  { %1012 = vadd.xlane.f32.xlu1 %v1009_v22 }
 0x643   :  { %v1003_v31 = vpop.xlane.xlu0 %1002 }
 0x644   :  { %v1006_v32 = vmul.f32 0.015625, %v1003_v31 }
 0x646   :  { %v1016_v35 = vmul.f32 %v1006_v32, %v1006_v32  ;;  %v1020_v45 = vsub.f32 %v996_v15, %v1006_v32 }
 0x647   :  { %v1005_v33 = vpop.xlane.xlu1 %1004  ;;  %v1011_v34 = vpop.xlane.xlu0 %1010 }
 0x648   :  { %v1007_v36 = vmul.f32 0.015625, %v1005_v33  ;;  %v1014_v37 = vmul.f32 0.015625, %v1011_v34 }
 0x64a   :  { %v1018_v38 = vsub.f32 %v1014_v37, %v1016_v35  ;;  %v1017_v40 = vmul.f32 %v1007_v36, %v1007_v36  ;;  %v1021_v48 = vsub.f32 %v997_v20, %v1007_v36 }
 0x64b   :  { %v1013_v39 = vpop.xlane.xlu1 %1012 }
 0x64c   :  { %v1022_v41 = vadd.f32 1e-05, %v1018_v38  ;;  %v1015_v42 = vmul.f32 0.015625, %v1013_v39 }
 0x64e   :  { %1464 = vrsqrt.f32 %v1022_v41  ;;  %v1019_v43 = vsub.f32 %v1015_v42, %v1017_v40 }
 0x650   :  { %v1023_v44 = vadd.f32 1e-05, %v1019_v43 }
 0x652   :  { %1466 = vrsqrt.f32 %v1023_v44 }
 0x65b   :  { %v1465_v46 = vpop.eup %1464 }
 0x65c   :  { %v1026_v0 = vmul.f32 %v1465_v46, %v1020_v45 }
 0x65e   :  { %v1034_v51 = vmul.f32 %v1259_v47, %v1026_v0 }
 0x65f   :  { %v1467_v49 = vpop.eup %1466 }
 0x660   :  { %v1027_v50 = vmul.f32 %v1467_v49, %v1021_v48  ;;  %v1042_v54 = vadd.f32 %v1260_v52, %v1034_v51 }
 0x662   :  { %v1035_v53 = vmul.f32 %v1259_v47, %v1027_v50 }
 0x664   :  { %v1043_v55 = vadd.f32 %v1260_v52, %v1035_v53 }
 0x666   :  { %v1060_v56 = vpack.c.bf16 %v1043_v55, %v1042_v54 }
 0x668   :  { %1348 = vmatmul.mubr.bf16.vlgmr.msra.gmra.mxu1 %v1060_v56 }
 0x728   :  { %v1150_v58 = vpop.f32.mrf.mxu1 }
 0x729   :  { %v1151_v59 = vadd.f32 %v1261_v57, %v1150_v58 }
 0x72a   :  { %v1349_v60 = vpop.f32.mrf.mxu1 }
 0x72b   :  { %1468 = vtanh.f32 %v1151_v59 }
 0x72c   :  { %v1153_v61 = vpop.f32.mrf.mxu1 }
 0x72d   :  { %v1154_v62 = vadd.f32 %v1261_v57, %v1153_v61 }
 0x72e   :  { %v1350_v63 = vpop.f32.mrf.mxu1 }
 0x72f   :  { %1470 = vtanh.f32 %v1154_v62 }
 0x738   :  { %v1469_v1 = vpop.eup %1468 }
 0x739   :  { %1159 = vst [vmem:[#allocation16] sm:$0xff] %v1469_v1 }
 0x73c   :  { %v1471_v2 = vpop.eup %1470 }
 0x73d   :  { %1160 = vst [vmem:[#allocation16 + $0x8] sm:$0xff] %v1471_v2 }
 0x73e   :  { %1643 = shalt.err (!%p1640_p2)
}
 0x73f   :  { %1172 = dma.vmem_to_hbm [thread:$0]  %s1167_s10, 256, %s1884_s13, [#allocation4], %s1670_s25, %s1670_s25, %s1671_s26  }
 0x740   :  { %1662 = dma.done.wait [#allocation4], 256  }
 0x741   :  { %1663 = vsyncadd [#allocation4], 4294967040 }
 0x742   :  { %1176 = vsyncpa [#allocation3], 1 }
 0x743   :  { %1177 = vsyncpa [#allocation6], 1 }
 0x744   :  { %1178 = vsyncpa [#allocation9], 1 }
 0x745   :  { %1179 = vsyncpa [#allocation12], 1 }
 0x746   :  { %1180 = vsyncpa [#allocation15], 1 }
 0x747   :  { %1181 = vsyncpa [#allocation4], 1 }

</bundles_post_ra>
